<compile_context>
chip_gen: v7x
topology: tpu7x:2x2x1
jax: 0.10.0
libtpu: 0.0.40
codegen_flags: <defaults>
</compile_context>

<pallas_src>
import math

import jax
import jax.numpy as jnp
from jax.experimental import pallas as pl
from jax.experimental.pallas import tpu as pltpu

LANE = 128  # TPU lane width; all "wide" dims are padded to this.


def mlp_kernel(x_ref, w1_ref, b1_ref, w2_ref, b2_ref, w3_ref, b3_ref, o_ref):
    # fc1 + ReLU  (bf16 x bf16 -> f32 accumulate on the MXU; f32 epilogue on the VPU)
    h = jnp.dot(x_ref[...], w1_ref[...], preferred_element_type=jnp.float32)
    h = jnp.maximum(h + b1_ref[...], 0.0)

    # fc2 + ReLU
    h2 = jnp.dot(h.astype(jnp.bfloat16), w2_ref[...],
                 preferred_element_type=jnp.float32)
    h2 = jnp.maximum(h2 + b2_ref[...], 0.0)

    # fc3 (output padded to 128 lanes -> lane-dense, unmasked store) + sigmoid
    out = jnp.dot(h2.astype(jnp.bfloat16), w3_ref[...],
                  preferred_element_type=jnp.float32)
    out = out + b3_ref[...]

    # sigmoid(x) = 1 / (1 + exp(-x)); exp and the approximate reciprocal both execute
    # in the otherwise-idle EUP slot.
    o_ref[...] = pl.reciprocal(1.0 + jnp.exp(-out), approx=True)


def net_forward(x, w1, b1, w2, b2, w3, b3, *, block_batch=128):
    """Full MLP forward in a single pallas_call with a batch grid.

    x:           (batch, in_features) float32 (cast to bf16 here)
    w1/w2/w3:    (in, out) bf16, already transposed from torch's (out, in) and
                 zero-padded so every 'out' dim is a multiple of 128 lanes.
    b1/b2/b3:    (1, out_padded) float32, zero-padded.
    Returns:     (batch, 1) float32 sigmoid outputs.
    """
    batch, in_features = x.shape
    h1p = w1.shape[1]
    h2p = w2.shape[1]
    outp = w3.shape[1]

    # Pad batch to a multiple of the batch tile; padded rows are sliced away below.
    padded_batch = block_batch * pl.cdiv(batch, block_batch)
    if padded_batch != batch:
        x = jnp.pad(x, ((0, padded_batch - batch), (0, 0)))

    # bf16 MXU operands (halves DMA bytes); accumulation stays f32 in-kernel.
    x = x.astype(jnp.bfloat16)

    grid = (padded_batch // block_batch,)
    resident = lambda i: (0, 0)  # weights/biases: same block every step -> VMEM-resident

    out_padded = pl.pallas_call(
        mlp_kernel,
        out_shape=jax.ShapeDtypeStruct((padded_batch, outp), jnp.float32),
        grid=grid,
        in_specs=[
            pl.BlockSpec((block_batch, in_features), lambda i: (i, 0)),  # x: batch-tiled
            pl.BlockSpec((in_features, h1p), resident),                  # w1
            pl.BlockSpec((1, h1p), resident),                            # b1
            pl.BlockSpec((h1p, h2p), resident),                          # w2
            pl.BlockSpec((1, h2p), resident),                            # b2
            pl.BlockSpec((h2p, outp), resident),                         # w3 (padded)
            pl.BlockSpec((1, outp), resident),                           # b3 (padded)
        ],
        out_specs=pl.BlockSpec((block_batch, outp), lambda i: (i, 0)),   # lane-dense store
        compiler_params=pltpu.CompilerParams(
            dimension_semantics=("parallel",)),
    )(x, w1, b1, w2, b2, w3, b3)

    # Drop batch padding and the 127 zero-weight output lanes (real output dim = 1).
    return out_padded[:batch, :1]


def _pad_to(a, rows, cols):
    return jnp.pad(a, ((0, rows - a.shape[0]), (0, cols - a.shape[1])))


def init_linear_params(key, fan_in, fan_out):
    """torch.nn.Linear default init: U(-1/sqrt(fan_in), 1/sqrt(fan_in)).

    Returns W in torch layout (fan_out, fan_in) and b as (fan_out,).
    """
    kw, kb = jax.random.split(key)
    bound = 1.0 / math.sqrt(fan_in)
    w = jax.random.uniform(kw, (fan_out, fan_in), jnp.float32, -bound, bound)
    b = jax.random.uniform(kb, (fan_out,), jnp.float32, -bound, bound)
    return w, b


def prepare_linear(w, b, *, pad_in, pad_out):
    """Transpose torch-layout (out,in) W to (in,out), zero-pad, cast W to bf16.

    Padded bias entries are exactly 0 so ReLU(0)=0 and the padded (zero) rows of the
    next layer's weight keep results identical to the unpadded network.
    """
    wt = _pad_to(w.T, pad_in, pad_out).astype(jnp.bfloat16)
    bt = _pad_to(b.reshape(1, -1), 1, pad_out).astype(jnp.float32)
    return wt, bt


if __name__ == "__main__":
    # Sizes implied by the original script (first entries of the hidden-size sweeps).
    input_size = 8        # number of feature columns of the min-max-normalized data
    hidden_size = 25      # hidden_size[0]
    hidden_sizeT = 20     # hidden_sizeT[0]
    batch = 256           # small demo batch; kernel tiles it in blocks of 128
    BLOCK_BATCH = 128

    key = jax.random.PRNGKey(0)
    kx, k1, k2, k3 = jax.random.split(key, 4)

    # Synthetic inputs already "min-max normalized" to [0, 1] like the reference script.
    x = jax.random.uniform(kx, (batch, input_size), jnp.float32)

    w1, b1 = init_linear_params(k1, input_size, hidden_size)
    w2, b2 = init_linear_params(k2, hidden_size, hidden_sizeT)
    w3, b3 = init_linear_params(k3, hidden_sizeT, 1)

    # Pad the lane ("out") dims to 128; keep x's feature dim at its natural width
    # (full-extent last dim is legal and avoids inflating x's HBM traffic 16x).
    w1p, b1p = prepare_linear(w1, b1, pad_in=input_size, pad_out=LANE)
    w2p, b2p = prepare_linear(w2, b2, pad_in=LANE, pad_out=LANE)
    w3p, b3p = prepare_linear(w3, b3, pad_in=LANE, pad_out=LANE)

    out = net_forward(x, w1p, b1p, w2p, b2p, w3p, b3p, block_batch=BLOCK_BATCH)
    out = jax.block_until_ready(out)

    # Pure-JAX reference using the same bf16-rounded operands the kernel consumes.
    def f32(a):
        return a.astype(jnp.float32)

    xb = f32(x.astype(jnp.bfloat16))
    h = jnp.maximum(xb @ f32(w1p) + b1p, 0.0)
    h2 = jnp.maximum(f32(h.astype(jnp.bfloat16)) @ f32(w2p) + b2p, 0.0)
    logits = f32(h2.astype(jnp.bfloat16)) @ f32(w3p) + b3p
    ref = jax.nn.sigmoid(logits)[:, :1]

    assert out.shape == (batch, 1)
    assert jnp.allclose(out, ref, atol=2e-3, rtol=2e-3), (
        float(jnp.max(jnp.abs(out - ref))))
    print("KERNEL_OK")
</pallas_src>

<mosaic_0001>
module attributes {stable_mosaic.version = 11 : i64} {
  func.func @mlp_kernel(%arg0: i32, %arg1: memref<128x8xbf16, #tpu.memory_space<vmem>>, %arg2: memref<8x128xbf16, #tpu.memory_space<vmem>>, %arg3: memref<1x128xf32, #tpu.memory_space<vmem>>, %arg4: memref<128x128xbf16, #tpu.memory_space<vmem>>, %arg5: memref<1x128xf32, #tpu.memory_space<vmem>>, %arg6: memref<128x128xbf16, #tpu.memory_space<vmem>>, %arg7: memref<1x128xf32, #tpu.memory_space<vmem>>, %arg8: memref<128x128xf32, #tpu.memory_space<vmem>>) attributes {dimension_semantics = [#tpu.dimension_semantics<parallel>], iteration_bounds = array<i64: 2>, scalar_prefetch = 0 : i64, scratch_operands = 0 : i64, tpu.core_type = #tpu.core_type<tc>, window_params = [{transform_indices = @transform_0, window_bounds = array<i64: 128, 8>}, {pipeline_mode = #tpu.pipeline_mode<synchronous>, transform_indices = @transform_1, window_bounds = array<i64: 8, 128>}, {pipeline_mode = #tpu.pipeline_mode<synchronous>, transform_indices = @transform_2, window_bounds = array<i64: 1, 128>}, {pipeline_mode = #tpu.pipeline_mode<synchronous>, transform_indices = @transform_3, window_bounds = array<i64: 128, 128>}, {pipeline_mode = #tpu.pipeline_mode<synchronous>, transform_indices = @transform_4, window_bounds = array<i64: 1, 128>}, {pipeline_mode = #tpu.pipeline_mode<synchronous>, transform_indices = @transform_5, window_bounds = array<i64: 128, 128>}, {pipeline_mode = #tpu.pipeline_mode<synchronous>, transform_indices = @transform_6, window_bounds = array<i64: 1, 128>}, {transform_indices = @transform_7, window_bounds = array<i64: 128, 128>}]} {
    %c0 = arith.constant 0 : index
    %c0_0 = arith.constant 0 : index
    %0 = vector.load %arg1[%c0, %c0_0] : memref<128x8xbf16, #tpu.memory_space<vmem>>, vector<128x8xbf16>
    %c0_1 = arith.constant 0 : index
    %c0_2 = arith.constant 0 : index
    %1 = vector.load %arg2[%c0_1, %c0_2] : memref<8x128xbf16, #tpu.memory_space<vmem>>, vector<8x128xbf16>
    %cst = arith.constant dense<0.000000e+00> : vector<128x128xf32>
    %2 = tpu.matmul %0, %1, %cst {dimension_numbers = #tpu.dot_dimension_numbers<[1], [0], [0], [1], [0, 0, 1, 1], [], []>} : vector<128x8xbf16>, vector<8x128xbf16>, vector<128x128xf32> -> vector<128x128xf32>
    %c0_3 = arith.constant 0 : index
    %c0_4 = arith.constant 0 : index
    %3 = vector.load %arg3[%c0_3, %c0_4] : memref<1x128xf32, #tpu.memory_space<vmem>>, vector<1x128xf32>
    %4 = vector.broadcast %3 : vector<1x128xf32> to vector<128x128xf32>
    %5 = arith.addf %2, %4 : vector<128x128xf32>
    %cst_5 = arith.constant 0.000000e+00 : f32
    %6 = vector.broadcast %cst_5 : f32 to vector<128x128xf32>
    %7 = arith.maximumf %5, %6 : vector<128x128xf32>
    %8 = arith.truncf %7 : vector<128x128xf32> to vector<128x128xbf16>
    %c0_6 = arith.constant 0 : index
    %c0_7 = arith.constant 0 : index
    %9 = vector.load %arg4[%c0_6, %c0_7] : memref<128x128xbf16, #tpu.memory_space<vmem>>, vector<128x128xbf16>
    %cst_8 = arith.constant dense<0.000000e+00> : vector<128x128xf32>
    %10 = tpu.matmul %8, %9, %cst_8 {dimension_numbers = #tpu.dot_dimension_numbers<[1], [0], [0], [1], [0, 0, 1, 1], [], []>} : vector<128x128xbf16>, vector<128x128xbf16>, vector<128x128xf32> -> vector<128x128xf32>
    %c0_9 = arith.constant 0 : index
    %c0_10 = arith.constant 0 : index
    %11 = vector.load %arg5[%c0_9, %c0_10] : memref<1x128xf32, #tpu.memory_space<vmem>>, vector<1x128xf32>
    %12 = vector.broadcast %11 : vector<1x128xf32> to vector<128x128xf32>
    %13 = arith.addf %10, %12 : vector<128x128xf32>
    %cst_11 = arith.constant 0.000000e+00 : f32
    %14 = vector.broadcast %cst_11 : f32 to vector<128x128xf32>
    %15 = arith.maximumf %13, %14 : vector<128x128xf32>
    %16 = arith.truncf %15 : vector<128x128xf32> to vector<128x128xbf16>
    %c0_12 = arith.constant 0 : index
    %c0_13 = arith.constant 0 : index
    %17 = vector.load %arg6[%c0_12, %c0_13] : memref<128x128xbf16, #tpu.memory_space<vmem>>, vector<128x128xbf16>
    %cst_14 = arith.constant dense<0.000000e+00> : vector<128x128xf32>
    %18 = tpu.matmul %16, %17, %cst_14 {dimension_numbers = #tpu.dot_dimension_numbers<[1], [0], [0], [1], [0, 0, 1, 1], [], []>} : vector<128x128xbf16>, vector<128x128xbf16>, vector<128x128xf32> -> vector<128x128xf32>
    %c0_15 = arith.constant 0 : index
    %c0_16 = arith.constant 0 : index
    %19 = vector.load %arg7[%c0_15, %c0_16] : memref<1x128xf32, #tpu.memory_space<vmem>>, vector<1x128xf32>
    %20 = vector.broadcast %19 : vector<1x128xf32> to vector<128x128xf32>
    %21 = arith.addf %18, %20 : vector<128x128xf32>
    %cst_17 = arith.constant 0.000000e+00 : f32
    %22 = vector.broadcast %cst_17 : f32 to vector<128x128xf32>
    %23 = arith.subf %22, %21 : vector<128x128xf32>
    %24 = math.exp %23 : vector<128x128xf32>
    %cst_18 = arith.constant 1.000000e+00 : f32
    %25 = vector.broadcast %cst_18 : f32 to vector<128x128xf32>
    %26 = arith.addf %25, %24 : vector<128x128xf32>
    %27 = tpu.reciprocal %26 {approx = true} : vector<128x128xf32> -> vector<128x128xf32>
    %c0_19 = arith.constant 0 : index
    %c0_20 = arith.constant 0 : index
    %28 = vector.load %arg8[%c0_19, %c0_20] : memref<128x128xf32, #tpu.memory_space<vmem>>, vector<128x128xf32>
    tpu.vector_store %arg8[%c0_19, %c0_20], %27 {strides = array<i32>} : memref<128x128xf32, #tpu.memory_space<vmem>>, vector<128x128xf32>,
    return
  }
  func.func @transform_0(%arg0: i32) -> (i32, i32) {
    %c0_i32 = arith.constant 0 : i32
    %c0_i32_0 = arith.constant 0 : i32
    return %arg0, %c0_i32 : i32, i32
  }
  func.func @transform_1(%arg0: i32) -> (i32, i32) {
    %c0_i32 = arith.constant 0 : i32
    %c0_i32_0 = arith.constant 0 : i32
    %c0_i32_1 = arith.constant 0 : i32
    return %c0_i32, %c0_i32_0 : i32, i32
  }
  func.func @transform_2(%arg0: i32) -> (i32, i32) {
    %c0_i32 = arith.constant 0 : i32
    %c0_i32_0 = arith.constant 0 : i32
    %c0_i32_1 = arith.constant 0 : i32
    return %c0_i32, %c0_i32_0 : i32, i32
  }
  func.func @transform_3(%arg0: i32) -> (i32, i32) {
    %c0_i32 = arith.constant 0 : i32
    %c0_i32_0 = arith.constant 0 : i32
    %c0_i32_1 = arith.constant 0 : i32
    return %c0_i32, %c0_i32_0 : i32, i32
  }
  func.func @transform_4(%arg0: i32) -> (i32, i32) {
    %c0_i32 = arith.constant 0 : i32
    %c0_i32_0 = arith.constant 0 : i32
    %c0_i32_1 = arith.constant 0 : i32
    return %c0_i32, %c0_i32_0 : i32, i32
  }
  func.func @transform_5(%arg0: i32) -> (i32, i32) {
    %c0_i32 = arith.constant 0 : i32
    %c0_i32_0 = arith.constant 0 : i32
    %c0_i32_1 = arith.constant 0 : i32
    return %c0_i32, %c0_i32_0 : i32, i32
  }
  func.func @transform_6(%arg0: i32) -> (i32, i32) {
    %c0_i32 = arith.constant 0 : i32
    %c0_i32_0 = arith.constant 0 : i32
    %c0_i32_1 = arith.constant 0 : i32
    return %c0_i32, %c0_i32_0 : i32, i32
  }
  func.func @transform_7(%arg0: i32) -> (i32, i32) {
    %c0_i32 = arith.constant 0 : i32
    %c0_i32_0 = arith.constant 0 : i32
    return %arg0, %c0_i32 : i32, i32
  }
}

</mosaic_0001>

<bundles_post_ra>
// kernel: tpu_custom_call.1
= control target key start
LH: loop header
LB: loop body
LE: loop exit
PB: predicated region body
PF: predicated region fallthrough
CT: control target
= control target key end

     0   :  { %12 = vsyncpa [#allocation3], 0  ;;  %s1646_s0 = inlined_call_operand.vmem [shape: bf16[256,8], index: 0, kind: input, shape index: {}]   ;;  %s1647_s1 = inlined_call_operand.vmem [shape: bf16[8,128], index: 1, kind: input, shape index: {}]   ;;  %s1648_s2 = inlined_call_operand.vmem [shape: f32[1,128], index: 2, kind: input, shape index: {}]   ;;  %s1649_s3 = inlined_call_operand.vmem [shape: bf16[128,128], index: 3, kind: input, shape index: {}]   ;;  %s1650_s4 = inlined_call_operand.vmem [shape: f32[1,128], index: 4, kind: input, shape index: {}]   ;;  %s1651_s5 = inlined_call_operand.vmem [shape: bf16[128,128], index: 5, kind: input, shape index: {}]   ;;  %s1652_s6 = inlined_call_operand.vmem [shape: f32[1,128], index: 6, kind: input, shape index: {}]   ;;  %s1653_s7 = inlined_call_operand.hbm [shape: f32[256,128], index: 7, kind: output, shape index: {}]  }
   0x1   :  { %14 = vsyncpa [#allocation3 + $0x1], 0  ;;  %s1435_s24 = smov 0   ;;  %s1437_s25 = smov 0  }
   0x2   :  { %s1439_s26 = smov 0   ;;  %s1441_s27 = smov 0  }
   0x3 LB: > { %s1456_s28 = sadd.s32 4294967295, %s1390_s27   ;;  %s1027_s29 = sadd.s32 4294967294, %s1390_s27   ;;  %s1390_s27 = sphi %s1441_s27, %s1659_s27   ;;  %s1386_s26 = sphi %s1439_s26, %s1658_s26   ;;  %s1382_s25 = sphi %s1437_s25, %s1657_s25   ;;  %s1378_s24 = sphi %s1435_s24, %s1656_s24  }
   0x4   : > { %s1460_s30 = sadd.s32 1, %s1390_s27   ;;  %s179_s8 = sadd.s32 1, %s1386_s26 }
   0x5   : > { %s176_s9 = ssub.s32 %s1390_s27, %s1460_s30  ;;  %p189_p0 = scmp.ne.s32.totalorder %s1386_s26, %s1382_s25 }
   0x6   : > { %p177_p1 = scmp.eq.s32.totalorder %s176_s9, 0  ;;  %p190_p2 = scmp.eq.s32.totalorder %s1456_s28, 1 }
   0x7   : > { %p195_p3 = scmp.ne.s32.totalorder %s1382_s25, %s1378_s24  ;;  %p196_p4 = scmp.eq.s32.totalorder %s1027_s29, 1 }
   0x8   : > { %s1471_s10 = scalar_select %p177_p1, %s1386_s26, %s179_s8  }
   0x9   : > { %p1473_p5 = por %p190_p2, %p189_p0  ;;  %p1477_p6 = por %p196_p4, %p195_p3 }
   0xa   : > { %p1030_p7 = scmp.ge.s32.totalorder %s1390_s27, 1  ;;  %p241_p8 = scmp.lt.s32.totalorder %s1390_s27, 3 }
   0xc   : > { %p242_p9 = pnand %p1030_p7, %p241_p8 }
   0xd   : > { %v297_v0 = vld [vmem:[%s1647_s1] sm:$0xf] (!%p242_p9)  ;;  %vm370_vm0 = vcmask (!%p242_p9), 1043456   ;;  %s1032_s15 = sshll.u32 (!%p242_p9), %s1456_s28, 4  ;;  %v1249_v3 = vld [vmem:[%s1649_s3 + $0x8] sm:$0xff] (!%p242_p9)   ;;  %v1250_v4 = vld [vmem:[%s1649_s3 + $0x10] sm:$0xff] (!%p242_p9)  }
   0xe   : > { %245 = sbr.rel (%p242_p9) target bundleno = 755 (0x2f3), region = 48  ;;  %v1248_v1 = vld [vmem:[%s1649_s3] sm:$0xff] (!%p242_p9)   ;;  %1198 = vmatprep.subr.msk.bf16.mxu0 (!%p242_p9), %vm370_vm0, %v297_v0  ;;  %v372_v2 = vsel (!%p242_p9), %vm370_vm0, %v297_v0, 0  ;;  %p274_p10 = scmp.lt.s32.totalorder (!%p242_p9), %s1032_s15, 31  ;;  %vm345_vm1 = vcmask (!%p242_p9), 64512   ;;  %v1251_v5 = vld [vmem:[%s1649_s3 + $0x18] sm:$0xff] (!%p242_p9)  }
   0xf   : > { %1117 = vmatpush3.bf16.msra.mxu0 (!%p242_p9), %v372_v2  ;;  %1134 = vmatprep.subr.bf16.mxu1 (!%p242_p9), %v1248_v1  ;;  %v1252_v9 = vld [vmem:[%s1649_s3 + $0x20] sm:$0xff] (!%p242_p9)   ;;  %v1253_v12 = vld [vmem:[%s1649_s3 + $0x28] sm:$0xff] (!%p242_p9)   ;;  %v1254_v16 = vld [vmem:[%s1649_s3 + $0x30] sm:$0xff] (!%p242_p9)   ;;  %s270_s16 = sand.u32 (!%p242_p9), 1, %s1382_s25   ;;  %s1074_s19 = sshll.u32 (!%p242_p9), %s1456_s28, 11 }
  0x10   : > { %1135 = vmatpush3.bf16.msra.mxu1 (!%p242_p9), %v1248_v1  ;;  %v1255_v17 = vld [vmem:[%s1649_s3 + $0x38] sm:$0xff] (!%p242_p9)   ;;  %v1256_v18 = vld [vmem:[%s1651_s5] sm:$0xff] (!%p242_p9)   ;;  %v1257_v19 = vld [vmem:[%s1651_s5 + $0x8] sm:$0xff] (!%p242_p9)   ;;  %s1031_s17 = sshll.u32 (!%p242_p9), %s270_s16, 7  ;;  %s1596_s23 = scalar_lea.hbm (!%p242_p9), %s1653_s7, %s1074_s19 }
  0x11   : > { %1136 = vmatprep.subr.bf16.mxu1 (!%p242_p9), %v1249_v3  ;;  %1166 = vmatprep.subr.bf16.mxu0 (!%p242_p9), %v1256_v18  ;;  %v1258_v20 = vld [vmem:[%s1651_s5 + $0x10] sm:$0xff] (!%p242_p9)   ;;  %v1259_v21 = vld [vmem:[%s1651_s5 + $0x18] sm:$0xff] (!%p242_p9)   ;;  %v1260_v22 = vld [vmem:[%s1651_s5 + $0x20] sm:$0xff] (!%p242_p9)   ;;  %s1576_s18 = scalar_lea.vmem (!%p242_p9), [#allocation2], %s1031_s17  ;;  %s1605_s28 = scalar_lea.sflag (!%p242_p9), [#allocation3], %s270_s16 }
  0x12   : > { %v1261_v23 = vld [vmem:[%s1651_s5 + $0x28] sm:$0xff] (!%p242_p9)   ;;  %v1034_v24 = vld [vmem:[%s1648_s2] ss:$0 sm:$0xff] (!%p242_p9)  ;;  %s965_s20 = sshll.u32 (!%p242_p9), %s1576_s18, 4  ;;  %s1598_s20 = int_to_ptr.vmem [resolvable:$true] %s965_s20 }
  0x13   : > { %s1328_s29 = scalar_lea.vmem (!%p242_p9), %s1598_s20, 2048 }
  0x14   : > { %1137 = vmatpush3.bf16.msra.mxu1 (!%p242_p9), %v1249_v3  ;;  %p1329_p11 = scmp.ne.s32.totalorder (!%p242_p9), %s1598_s20, %s1328_s29 }
  0x15   : > { %s1661_s15 = smov (!%p274_p10, %s1032_s15), 31  ;;  %1138 = vmatprep.subr.bf16.mxu1 %v1250_v4 }
  0x16   : > { %s1033_s22 = sshll.u32 %s1661_s15, 2  ;;  %p1330_p12 = pnand %p1329_p11, %p1473_p5 }
  0x17   : > { %s277_s8 = scalar_lea.vmem %s1646_s0, %s1033_s22 }
  0x18   : > { %v1240_v6 = vld [vmem:[%s277_s8] sm:$0xff]   ;;  %v1241_v7 = vld [vmem:[%s277_s8 + $0x8] sm:$0xff]   ;;  %v1242_v8 = vld [vmem:[%s277_s8 + $0x10] sm:$0xff]   ;;  %1139 = vmatpush3.bf16.msra.mxu1 %v1250_v4  ;;  %p1331_p13 = pneg %p1330_p12 }
  0x19   : > { %1118 = vmatprep.mubr.msk.bf16.mxu0 %vm345_vm1, %v1240_v6  ;;  %1140 = vmatprep.subr.bf16.mxu1 %v1251_v5  ;;  %v1243_v10 = vld [vmem:[%s277_s8 + $0x18] sm:$0xff]   ;;  %v1244_v11 = vld [vmem:[%s277_s8 + $0x20] sm:$0xff]   ;;  %v1245_v13 = vld [vmem:[%s277_s8 + $0x28] sm:$0xff]  }
  0x1a   : > { %1119 = vmatmul.mubr.msk.bf16.vlgmr.msra.gmra.mrb[0].mxu0 %vm345_vm1, %v1241_v7  ;;  %v1246_v14 = vld [vmem:[%s277_s8 + $0x30] sm:$0xff]   ;;  %v1247_v15 = vld [vmem:[%s277_s8 + $0x38] sm:$0xff]   ;;  %s1392_s8 = smov [#allocation2]  }
  0x1b   : > { %1122 = vmatprep.mubr.msk.bf16.mxu0 %vm345_vm1, %v1242_v8  ;;  %1167 = vmatpush3.bf16.msra.mxu0 %v1256_v18  ;;  %v1263_v18 = vld [vmem:[%s1651_s5 + $0x38] sm:$0xff]   ;;  %s1332_s9 = sshll.u32 %s1392_s8, 4  ;;  %s1333_s9 = int_to_ptr.vmem [resolvable:$false] %s1332_s9 }
  0x1c   : > { %1141 = vmatpush3.bf16.msra.mxu1 %v1251_v5  ;;  %1168 = vmatprep.subr.bf16.mxu0 %v1257_v19  ;;  %s1334_s13 = scalar_lea.vmem %s1333_s9, 4096  ;;  %p1335_p0 = scmp.lt.s32.totalorder %s1598_s20, %s1333_s9 }
  0x1d   : > { %1142 = vmatprep.subr.bf16.mxu1 %v1252_v9  ;;  %p1336_p1 = scmp.lt.s32.totalorder %s1334_s13, %s1328_s29 }
  0x1f   : > { %1169 = vmatpush3.bf16.msra.mxu0 %v1257_v19  ;;  %v1051_v19 = vld [vmem:[%s1650_s4] ss:$0 sm:$0xff]  ;;  %p1337_p2 = por %p1336_p1, %p1335_p0 }
  0x20   : > { %1143 = vmatpush3.bf16.msra.mxu1 %v1252_v9  ;;  %1170 = vmatprep.subr.bf16.mxu0 %v1258_v20 }
  0x21   : > { %1144 = vmatprep.subr.bf16.mxu1 %v1253_v12  ;;  %p1338_p3 = pnand %p1337_p2, %p1331_p13 }
  0x22   : > { %1123 = vmatmul.mubr.msk.bf16.gmra.mrb[4].mxu0 %vm345_vm1, %v1243_v10 }
  0x23   : > { %1126 = vmatprep.mubr.msk.bf16.mxu0 %vm345_vm1, %v1244_v11  ;;  %1171 = vmatpush3.bf16.msra.mxu0 %v1258_v20 }
  0x24   : > { %1145 = vmatpush3.bf16.msra.mxu1 %v1253_v12  ;;  %1172 = vmatprep.subr.bf16.mxu0 %v1259_v21 }
  0x25   : > { %1146 = vmatprep.subr.bf16.mxu1 %v1254_v16 }
  0x27   : > { %1173 = vmatpush3.bf16.msra.mxu0 %v1259_v21 }
  0x28   : > { %1147 = vmatpush3.bf16.msra.mxu1 %v1254_v16  ;;  %1174 = vmatprep.subr.bf16.mxu0 %v1260_v22 }
  0x29   : > { %1148 = vmatprep.subr.bf16.mxu1 %v1255_v17 }
  0x2a   : > { %1127 = vmatmul.mubr.msk.bf16.gmra.mrb[8].mxu0 %vm345_vm1, %v1245_v13 }
  0x2b   : > { %1130 = vmatprep.mubr.msk.bf16.mxu0 %vm345_vm1, %v1246_v14  ;;  %1175 = vmatpush3.bf16.msra.mxu0 %v1260_v22 }
  0x2c   : > { %1149 = vmatpush3.bf16.msra.mxu1 %v1255_v17  ;;  %1176 = vmatprep.subr.bf16.mxu0 %v1261_v23  ;;  %v1262_v17 = vld [vmem:[%s1651_s5 + $0x30] sm:$0xff]  }
  0x2f   : > { %1177 = vmatpush3.bf16.msra.mxu0 %v1261_v23 }
  0x30   : > { %1178 = vmatprep.subr.bf16.mxu0 %v1262_v17 }
  0x32   : > { %1131 = vmatmul.mubr.msk.bf16.gmra.mrb[12].mxu0 %vm345_vm1, %v1247_v15 }
  0x33   : > { %1179 = vmatpush3.bf16.msra.mxu0 %v1262_v17 }
  0x34   : > { %1180 = vmatprep.subr.bf16.mxu0 %v1263_v18 }
  0x37   : > { %1181 = vmatpush3.bf16.msra.mxu0 %v1263_v18 }
  0xed   : > { %v1120_v25 = vpop.f32.mrb[0].mxu0 }
  0xee   : > { %v417_v26 = vadd.f32 %v1120_v25, %v1034_v24  ;;  %v408_v27 = vpop.f32.mrb[1].mxu0 }
  0xef   : > { %v409_v28 = vadd.f32 %v1034_v24, %v408_v27  ;;  %v1121_v29 = vpop.f32.mrb[2].mxu0 }
  0xf0   : > { %v420_v30 = vadd.f32 %v1121_v29, %v1034_v24  ;;  %v411_v31 = vpop.f32.mrb[3].mxu0  ;;  %v473_v33 = vmax.f32 %v417_v26, 0.0 }
  0xf1   : > { %v412_v32 = vadd.f32 %v1034_v24, %v411_v31  ;;  %v471_v35 = vmax.f32 %v409_v28, 0.0 }
  0xf2   : > { %v474_v34 = vmax.f32 %v420_v30, 0.0 }
  0xf3   : > { %v472_v36 = vmax.f32 %v412_v32, 0.0 }
  0xf4   : > { %v488_v37 = vpack.c.bf16 %v474_v34, %v473_v33 }
  0xf5   : > { %v1124_v38 = vpop.f32.mrb[4].mxu0  ;;  %v487_v39 = vpack.c.bf16 %v472_v36, %v471_v35 }
  0xf6   : > { %v433_v40 = vadd.f32 %v1124_v38, %v1034_v24  ;;  %v424_v41 = vpop.f32.mrb[5].mxu0 }
  0xf7   : > { %v425_v42 = vadd.f32 %v1034_v24, %v424_v41  ;;  %v1125_v43 = vpop.f32.mrb[6].mxu0  ;;  %1150 = vmatprep.mubr.bf16.mxu1 %v487_v39 }
  0xf8   : > { %v436_v44 = vadd.f32 %v1125_v43, %v1034_v24  ;;  %v427_v45 = vpop.f32.mrb[7].mxu0  ;;  %1151 = vmatmul.mubr.bf16.vlgmr.msra.gmra.mrb[0].mxu1 %v488_v37  ;;  %v477_v47 = vmax.f32 %v433_v40, 0.0 }
  0xf9   : > { %v428_v46 = vadd.f32 %v1034_v24, %v427_v45  ;;  %v475_v49 = vmax.f32 %v425_v42, 0.0 }
  0xfa   : > { %v478_v48 = vmax.f32 %v436_v44, 0.0 }
  0xfb   : > { %v476_v50 = vmax.f32 %v428_v46, 0.0 }
  0xfc   : > { %v490_v51 = vpack.c.bf16 %v478_v48, %v477_v47 }
  0xfd   : > { %v489_v52 = vpack.c.bf16 %v476_v50, %v475_v49  ;;  %v1128_v53 = vpop.f32.mrb[8].mxu0 }
  0xfe   : > { %v449_v54 = vadd.f32 %v1128_v53, %v1034_v24  ;;  %v440_v55 = vpop.f32.mrb[9].mxu0 }
  0xff   : > { %v441_v56 = vadd.f32 %v1034_v24, %v440_v55  ;;  %v1129_v57 = vpop.f32.mrb[10].mxu0  ;;  %1154 = vmatprep.mubr.bf16.mxu1 %v489_v52 }
 0x100   : > { %v452_v58 = vadd.f32 %v1129_v57, %v1034_v24  ;;  %v443_v59 = vpop.f32.mrb[11].mxu0  ;;  %1155 = vmatmul.mubr.bf16.gmra.mrb[4].mxu1 %v490_v51  ;;  %v481_v61 = vmax.f32 %v449_v54, 0.0 }
 0x101   : > { %v444_v60 = vadd.f32 %v1034_v24, %v443_v59  ;;  %v479_v63 = vmax.f32 %v441_v56, 0.0 }
 0x102   : > { %v482_v62 = vmax.f32 %v452_v58, 0.0 }
 0x103   : > { %v480_v0 = vmax.f32 %v444_v60, 0.0 }
 0x104   : > { %v492_v1 = vpack.c.bf16 %v482_v62, %v481_v61 }
 0x105   : > { %v491_v2 = vpack.c.bf16 %v480_v0, %v479_v63  ;;  %v1132_v3 = vpop.f32.mrb[12].mxu0 }
 0x106   : > { %v465_v4 = vadd.f32 %v1132_v3, %v1034_v24  ;;  %v456_v5 = vpop.f32.mrb[13].mxu0 }
 0x107   : > { %v457_v6 = vadd.f32 %v1034_v24, %v456_v5  ;;  %v1133_v7 = vpop.f32.mrb[14].mxu0  ;;  %1158 = vmatprep.mubr.bf16.mxu1 %v491_v2 }
 0x108   : > { %v468_v8 = vadd.f32 %v1133_v7, %v1034_v24  ;;  %v459_v9 = vpop.f32.mrb[15].mxu0  ;;  %1159 = vmatmul.mubr.bf16.gmra.mrb[8].mxu1 %v492_v1  ;;  %v485_v11 = vmax.f32 %v465_v4, 0.0 }
 0x109   : > { %v460_v10 = vadd.f32 %v1034_v24, %v459_v9  ;;  %v483_v13 = vmax.f32 %v457_v6, 0.0 }
 0x10a   : > { %v486_v12 = vmax.f32 %v468_v8, 0.0 }
 0x10b   : > { %v484_v14 = vmax.f32 %v460_v10, 0.0 }
 0x10c   : > { %v494_v15 = vpack.c.bf16 %v486_v12, %v485_v11  ;;  %v1555_v12 = vld [vmem:[%s1652_s6] ss:$0 sm:$0xff] }
 0x10d   : > { %v493_v16 = vpack.c.bf16 %v484_v14, %v483_v13 }
 0x10f   : > { %1162 = vmatprep.mubr.bf16.mxu1 %v493_v16 }
 0x110   : > { %1163 = vmatmul.mubr.bf16.gmra.mrb[12].mxu1 %v494_v15 }
 0x1cb   : > { %v1152_v20 = vpop.f32.mrb[0].mxu1 }
 0x1cc   : > { %v609_v21 = vadd.f32 %v1152_v20, %v1051_v19  ;;  %v600_v22 = vpop.f32.mrb[1].mxu1 }
 0x1cd   : > { %v601_v23 = vadd.f32 %v1051_v19, %v600_v22  ;;  %v1153_v24 = vpop.f32.mrb[2].mxu1 }
 0x1ce   : > { %v612_v25 = vadd.f32 %v1153_v24, %v1051_v19  ;;  %v603_v26 = vpop.f32.mrb[3].mxu1  ;;  %v665_v28 = vmax.f32 %v609_v21, 0.0 }
 0x1cf   : > { %v604_v27 = vadd.f32 %v1051_v19, %v603_v26  ;;  %v663_v30 = vmax.f32 %v601_v23, 0.0 }
 0x1d0   : > { %v666_v29 = vmax.f32 %v612_v25, 0.0 }
 0x1d1   : > { %v664_v31 = vmax.f32 %v604_v27, 0.0 }
 0x1d2   : > { %v680_v32 = vpack.c.bf16 %v666_v29, %v665_v28 }
 0x1d3   : > { %v679_v33 = vpack.c.bf16 %v664_v31, %v663_v30  ;;  %v1156_v34 = vpop.f32.mrb[4].mxu1 }
 0x1d4   : > { %v625_v35 = vadd.f32 %v1156_v34, %v1051_v19  ;;  %v616_v36 = vpop.f32.mrb[5].mxu1 }
 0x1d5   : > { %v617_v37 = vadd.f32 %v1051_v19, %v616_v36  ;;  %v1157_v38 = vpop.f32.mrb[6].mxu1  ;;  %1182 = vmatprep.mubr.bf16.mxu0 %v679_v33 }
 0x1d6   : > { %v628_v39 = vadd.f32 %v1157_v38, %v1051_v19  ;;  %v619_v40 = vpop.f32.mrb[7].mxu1  ;;  %1183 = vmatmul.mubr.bf16.vlgmr.msra.gmra.mrb[16].mxu0 %v680_v32  ;;  %v669_v42 = vmax.f32 %v625_v35, 0.0 }
 0x1d7   : > { %v620_v41 = vadd.f32 %v1051_v19, %v619_v40  ;;  %v667_v44 = vmax.f32 %v617_v37, 0.0 }
 0x1d8   : > { %v670_v43 = vmax.f32 %v628_v39, 0.0 }
 0x1d9   : > { %v668_v45 = vmax.f32 %v620_v41, 0.0 }
 0x1da   : > { %v682_v46 = vpack.c.bf16 %v670_v43, %v669_v42 }
 0x1db   : > { %v681_v47 = vpack.c.bf16 %v668_v45, %v667_v44  ;;  %v1160_v48 = vpop.f32.mrb[8].mxu1 }
 0x1dc   : > { %v641_v49 = vadd.f32 %v1160_v48, %v1051_v19  ;;  %v632_v50 = vpop.f32.mrb[9].mxu1 }
 0x1dd   : > { %v633_v51 = vadd.f32 %v1051_v19, %v632_v50  ;;  %v1161_v52 = vpop.f32.mrb[10].mxu1  ;;  %1186 = vmatprep.mubr.bf16.mxu0 %v681_v47 }
 0x1de   : > { %v644_v53 = vadd.f32 %v1161_v52, %v1051_v19  ;;  %v635_v54 = vpop.f32.mrb[11].mxu1  ;;  %1187 = vmatmul.mubr.bf16.gmra.mrb[20].mxu0 %v682_v46  ;;  %v673_v56 = vmax.f32 %v641_v49, 0.0 }
 0x1df   : > { %v636_v55 = vadd.f32 %v1051_v19, %v635_v54  ;;  %v671_v58 = vmax.f32 %v633_v51, 0.0 }
 0x1e0   : > { %v674_v57 = vmax.f32 %v644_v53, 0.0 }
 0x1e1   : > { %v672_v59 = vmax.f32 %v636_v55, 0.0 }
 0x1e2   : > { %v684_v60 = vpack.c.bf16 %v674_v57, %v673_v56 }
 0x1e3   : > { %v683_v61 = vpack.c.bf16 %v672_v59, %v671_v58  ;;  %v1164_v62 = vpop.f32.mrb[12].mxu1 }
 0x1e4   : > { %v657_v63 = vadd.f32 %v1164_v62, %v1051_v19  ;;  %v648_v0 = vpop.f32.mrb[13].mxu1 }
 0x1e5   : > { %v649_v1 = vadd.f32 %v1051_v19, %v648_v0  ;;  %v1165_v2 = vpop.f32.mrb[14].mxu1  ;;  %1190 = vmatprep.mubr.bf16.mxu0 %v683_v61 }
 0x1e6   : > { %v660_v3 = vadd.f32 %v1165_v2, %v1051_v19  ;;  %v651_v4 = vpop.f32.mrb[15].mxu1  ;;  %1191 = vmatmul.mubr.bf16.gmra.mrb[24].mxu0 %v684_v60  ;;  %v677_v6 = vmax.f32 %v657_v63, 0.0 }
 0x1e7   : > { %v652_v5 = vadd.f32 %v1051_v19, %v651_v4  ;;  %v675_v8 = vmax.f32 %v649_v1, 0.0 }
 0x1e8   : > { %v678_v7 = vmax.f32 %v660_v3, 0.0 }
 0x1e9   : > { %v676_v9 = vmax.f32 %v652_v5, 0.0 }
 0x1ea   : > { %v686_v10 = vpack.c.bf16 %v678_v7, %v677_v6 }
 0x1eb   : > { %v685_v11 = vpack.c.bf16 %v676_v9, %v675_v8 }
 0x1ed   : > { %1194 = vmatprep.mubr.bf16.mxu0 %v685_v11 }
 0x1ee   : > { %1195 = vmatmul.mubr.bf16.gmra.mrb[28].mxu0 %v686_v10 }
 0x2a9   : > { %v1184_v13 = vpop.f32.mrb[16].mxu0 }
 0x2aa   : > { %v801_v14 = vadd.f32 %v1184_v13, %v1555_v12  ;;  %v792_v15 = vpop.f32.mrb[17].mxu0 }
 0x2ab   : > { %v793_v16 = vadd.f32 %v1555_v12, %v792_v15  ;;  %v1185_v17 = vpop.f32.mrb[18].mxu0 }
 0x2ac   : > { %v857_v18 = vsub.f32 0.0, %v801_v14  ;;  %v804_v19 = vadd.f32 %v1185_v17, %v1555_v12  ;;  %v795_v20 = vpop.f32.mrb[19].mxu0 }
 0x2ad   : > { %v855_v21 = vsub.f32 0.0, %v793_v16  ;;  %v796_v22 = vadd.f32 %v1555_v12, %v795_v20 }
 0x2ae   : > { %v875_v23 = vmul.f32 1.442695, %v857_v18  ;;  %v858_v24 = vsub.f32 0.0, %v804_v19 }
 0x2af   : > { %v871_v25 = vmul.f32 1.442695, %v855_v21  ;;  %v856_v26 = vsub.f32 0.0, %v796_v22 }
 0x2b0   : > { %1264 = vpow2.f32 %v875_v23  ;;  %v877_v27 = vmul.f32 1.442695, %v858_v24 }
 0x2b1   : > { %1266 = vpow2.f32 %v871_v25  ;;  %v873_v28 = vmul.f32 1.442695, %v856_v26  ;;  %v1188_v29 = vpop.f32.mrb[20].mxu0 }
 0x2b2   : > { %1268 = vpow2.f32 %v877_v27  ;;  %v817_v30 = vadd.f32 %v1188_v29, %v1555_v12  ;;  %v808_v31 = vpop.f32.mrb[21].mxu0 }
 0x2b3   : > { %1270 = vpow2.f32 %v873_v28  ;;  %v809_v32 = vadd.f32 %v1555_v12, %v808_v31  ;;  %v1189_v33 = vpop.f32.mrb[22].mxu0 }
 0x2b4   : > { %v861_v34 = vsub.f32 0.0, %v817_v30  ;;  %v820_v35 = vadd.f32 %v1189_v33, %v1555_v12  ;;  %v811_v36 = vpop.f32.mrb[23].mxu0 }
 0x2b5   : > { %v859_v37 = vsub.f32 0.0, %v809_v32  ;;  %v812_v38 = vadd.f32 %v1555_v12, %v811_v36 }
 0x2b6   : > { %v883_v39 = vmul.f32 1.442695, %v861_v34  ;;  %v862_v40 = vsub.f32 0.0, %v820_v35 }
 0x2b7   : > { %v879_v41 = vmul.f32 1.442695, %v859_v37  ;;  %v860_v42 = vsub.f32 0.0, %v812_v38 }
 0x2b8   : > { %1272 = vpow2.f32 %v883_v39  ;;  %v885_v43 = vmul.f32 1.442695, %v862_v40 }
 0x2b9   : > { %1274 = vpow2.f32 %v879_v41  ;;  %v881_v44 = vmul.f32 1.442695, %v860_v42  ;;  %v1192_v45 = vpop.f32.mrb[24].mxu0 }
 0x2ba   : > { %v1265_v46 = vpop.eup %1264  ;;  %1276 = vpow2.f32 %v885_v43  ;;  %v833_v47 = vadd.f32 %v1192_v45, %v1555_v12  ;;  %v824_v48 = vpop.f32.mrb[25].mxu0 }
 0x2bb   : > { %v1267_v49 = vpop.eup %1266  ;;  %v905_v50 = vadd.f32 1.0, %v1265_v46  ;;  %1278 = vpow2.f32 %v881_v44  ;;  %v825_v51 = vadd.f32 %v1555_v12, %v824_v48  ;;  %v1193_v52 = vpop.f32.mrb[26].mxu0 }
 0x2bc   : > { %v1269_v53 = vpop.eup %1268  ;;  %v903_v54 = vadd.f32 1.0, %v1267_v49  ;;  %v865_v55 = vsub.f32 0.0, %v833_v47  ;;  %v836_v56 = vadd.f32 %v1193_v52, %v1555_v12  ;;  %v827_v57 = vpop.f32.mrb[27].mxu0 }
 0x2bd   : > { %v1271_v58 = vpop.eup %1270  ;;  %1280 = vrcp.f32 %v905_v50  ;;  %v906_v59 = vadd.f32 1.0, %v1269_v53  ;;  %v863_v60 = vsub.f32 0.0, %v825_v51  ;;  %v828_v61 = vadd.f32 %v1555_v12, %v827_v57 }
 0x2be   : > { %1282 = vrcp.f32 %v903_v54  ;;  %v904_v62 = vadd.f32 1.0, %v1271_v58  ;;  %v891_v63 = vmul.f32 1.442695, %v865_v55  ;;  %v866_v0 = vsub.f32 0.0, %v836_v56 }
 0x2bf   : > { %1284 = vrcp.f32 %v906_v59  ;;  %v887_v1 = vmul.f32 1.442695, %v863_v60  ;;  %v864_v2 = vsub.f32 0.0, %v828_v61 }
 0x2c0   : > { %1286 = vrcp.f32 %v904_v62  ;;  %v893_v3 = vmul.f32 1.442695, %v866_v0 }
 0x2c1   : > { %1288 = vpow2.f32 %v891_v63  ;;  %v889_v4 = vmul.f32 1.442695, %v864_v2  ;;  %v1196_v5 = vpop.f32.mrb[28].mxu0 }
 0x2c2   : > { %v1273_v6 = vpop.eup %1272  ;;  %1290 = vpow2.f32 %v887_v1  ;;  %v849_v7 = vadd.f32 %v1196_v5, %v1555_v12  ;;  %v840_v8 = vpop.f32.mrb[29].mxu0 }
 0x2c3   : > { %v1275_v9 = vpop.eup %1274  ;;  %v909_v10 = vadd.f32 1.0, %v1273_v6  ;;  %1292 = vpow2.f32 %v893_v3  ;;  %v841_v11 = vadd.f32 %v1555_v12, %v840_v8  ;;  %v1197_v13 = vpop.f32.mrb[30].mxu0 }
 0x2c4   : > { %v1277_v14 = vpop.eup %1276  ;;  %v907_v15 = vadd.f32 1.0, %v1275_v9  ;;  %1294 = vpow2.f32 %v889_v4  ;;  %v869_v16 = vsub.f32 0.0, %v849_v7  ;;  %v852_v17 = vadd.f32 %v1197_v13, %v1555_v12  ;;  %v843_v18 = vpop.f32.mrb[31].mxu0 }
 0x2c5   : > { %v1279_v19 = vpop.eup %1278  ;;  %1296 = vrcp.f32 %v909_v10  ;;  %v910_v20 = vadd.f32 1.0, %v1277_v14  ;;  %v867_v21 = vsub.f32 0.0, %v841_v11  ;;  %v844_v22 = vadd.f32 %v1555_v12, %v843_v18 }
 0x2c6   : > { %1298 = vrcp.f32 %v907_v15  ;;  %v908_v23 = vadd.f32 1.0, %v1279_v19  ;;  %v899_v24 = vmul.f32 1.442695, %v869_v16  ;;  %v870_v25 = vsub.f32 0.0, %v852_v17 }
 0x2c7   : > { %v1281_v26 = vpop.eup %1280  ;;  %1300 = vrcp.f32 %v910_v20  ;;  %v895_v27 = vmul.f32 1.442695, %v867_v21  ;;  %v868_v28 = vsub.f32 0.0, %v844_v22 }
 0x2c8   : > { %v1283_v29 = vpop.eup %1282  ;;  %937 = vst [vmem:[%s1576_s18 + $0x10] sm:$0xff] %v1281_v26  ;;  %1302 = vrcp.f32 %v908_v23  ;;  %v901_v30 = vmul.f32 1.442695, %v870_v25 }
 0x2c9   : > { %v1285_v31 = vpop.eup %1284  ;;  %935 = vst [vmem:[%s1576_s18] sm:$0xff] %v1283_v29  ;;  %1304 = vpow2.f32 %v899_v24  ;;  %v897_v12 = vmul.f32 1.442695, %v868_v28 }
 0x2ca   : > { %v1287_v32 = vpop.eup %1286  ;;  %938 = vst [vmem:[%s1576_s18 + $0x18] sm:$0xff] %v1285_v31  ;;  %1306 = vpow2.f32 %v895_v27 }
 0x2cb   : > { %v1289_v33 = vpop.eup %1288  ;;  %936 = vst [vmem:[%s1576_s18 + $0x8] sm:$0xff] %v1287_v32  ;;  %1308 = vpow2.f32 %v901_v30 }
 0x2cc   : > { %v1291_v34 = vpop.eup %1290  ;;  %v913_v35 = vadd.f32 1.0, %v1289_v33  ;;  %1310 = vpow2.f32 %v897_v12 }
 0x2cd   : > { %v1293_v36 = vpop.eup %1292  ;;  %v911_v37 = vadd.f32 1.0, %v1291_v34 }
 0x2ce   : > { %v1295_v38 = vpop.eup %1294  ;;  %1312 = vrcp.f32 %v913_v35  ;;  %v914_v39 = vadd.f32 1.0, %v1293_v36 }
 0x2cf   : > { %v1297_v40 = vpop.eup %1296  ;;  %1314 = vrcp.f32 %v911_v37  ;;  %v912_v41 = vadd.f32 1.0, %v1295_v38 }
 0x2d0   : > { %v1299_v42 = vpop.eup %1298  ;;  %941 = vst [vmem:[%s1576_s18 + $0x30] sm:$0xff] %v1297_v40  ;;  %1316 = vrcp.f32 %v914_v39 }
 0x2d1   : > { %v1301_v43 = vpop.eup %1300  ;;  %939 = vst [vmem:[%s1576_s18 + $0x20] sm:$0xff] %v1299_v42  ;;  %1318 = vrcp.f32 %v912_v41 }
 0x2d2   : > { %v1303_v44 = vpop.eup %1302  ;;  %942 = vst [vmem:[%s1576_s18 + $0x38] sm:$0xff] %v1301_v43 }
 0x2d3   : > { %v1305_v45 = vpop.eup %1304  ;;  %940 = vst [vmem:[%s1576_s18 + $0x28] sm:$0xff] %v1303_v44 }
 0x2d4   : > { %v1307_v46 = vpop.eup %1306  ;;  %v917_v47 = vadd.f32 1.0, %v1305_v45 }
 0x2d5   : > { %v1309_v48 = vpop.eup %1308  ;;  %v915_v49 = vadd.f32 1.0, %v1307_v46 }
 0x2d6   : > { %v1311_v50 = vpop.eup %1310  ;;  %1320 = vrcp.f32 %v917_v47  ;;  %v918_v51 = vadd.f32 1.0, %v1309_v48 }
 0x2d7   : > { %1322 = vrcp.f32 %v915_v49  ;;  %v916_v52 = vadd.f32 1.0, %v1311_v50 }
 0x2d8   : > { %v1313_v53 = vpop.eup %1312  ;;  %1324 = vrcp.f32 %v918_v51 }
 0x2d9   : > { %v1315_v54 = vpop.eup %1314  ;;  %945 = vst [vmem:[%s1576_s18 + $0x50] sm:$0xff] %v1313_v53  ;;  %1326 = vrcp.f32 %v916_v52 }
 0x2da   : > { %v1317_v55 = vpop.eup %1316  ;;  %943 = vst [vmem:[%s1576_s18 + $0x40] sm:$0xff] %v1315_v54 }
 0x2db   : > { %v1319_v56 = vpop.eup %1318  ;;  %946 = vst [vmem:[%s1576_s18 + $0x58] sm:$0xff] %v1317_v55 }
 0x2dc   : > { %944 = vst [vmem:[%s1576_s18 + $0x48] sm:$0xff] %v1319_v56 }
 0x2e0   : > { %v1321_v57 = vpop.eup %1320 }
 0x2e1   : > { %v1323_v58 = vpop.eup %1322  ;;  %949 = vst [vmem:[%s1576_s18 + $0x70] sm:$0xff] %v1321_v57 }
 0x2e2   : > { %v1325_v59 = vpop.eup %1324  ;;  %947 = vst [vmem:[%s1576_s18 + $0x60] sm:$0xff] %v1323_v58 }
 0x2e3   : > { %v1327_v60 = vpop.eup %1326  ;;  %950 = vst [vmem:[%s1576_s18 + $0x78] sm:$0xff] %v1325_v59 }
 0x2e4   : > { %948 = vst [vmem:[%s1576_s18 + $0x68] sm:$0xff] %v1327_v60 }
 0x2e5   : > { %1341 = shalt.err (!%p1338_p3)
}
 0x2e6   : > { %s1342_s14 = scalar_lea.hbm %s1596_s23, 2048  ;;  %s1346_s17 = scalar_lea.hbm %s1653_s7, 4096 }
 0x2e7   : > { %p1343_p4 = scmp.ne.s32.totalorder %s1596_s23, %s1342_s14  ;;  %p1347_p9 = scmp.lt.u32.totalorder %s1596_s23, %s1653_s7 }
 0x2e8   : > { %p1348_p10 = scmp.lt.u32.totalorder %s1346_s17, %s1342_s14  ;;  %p1350_p12 = scmp.lt.u32.totalorder %s1342_s14, %s1596_s23 }
 0x2e9   : > { %p1344_p7 = pnand %p1343_p4, %p1473_p5 }
 0x2ea   : > { %p1349_p11 = por %p1348_p10, %p1347_p9 }
 0x2eb   : > { %p1345_p8 = pneg %p1344_p7 }
 0x2ec   : > { %p1351_p13 = por %p1350_p12, %p1349_p11 }
 0x2ee   : > { %p1352_p0 = pnand %p1351_p13, %p1345_p8 }
 0x2f0   : > { %1355 = shalt.err (!%p1352_p0)
}
 0x2f1   : > { %s1393_s21 = smov 128   ;;  %s1394_s22 = smov 8  }
 0x2f2   : > { %1199 = dma.vmem_to_hbm [thread:$0]  (%p1473_p5), %s1598_s20, 2048, %s1596_s23, %s1605_s28, %s1393_s21, %s1393_s21, %s1394_s22  }
 0x2f3 PF: > { %p1205_p1 = scmp.ge.s32.totalorder %s1390_s27, 2  ;;  %s980_s29 = sand.u32 1, %s1378_s24  }
 0x2f4   : > { %s981_s8 = scalar_lea.sflag [#allocation3], %s980_s29 }
 0x2f5   : > { %p1202_p2 = pnand %p1205_p1, %p1477_p6 }
 0x2f7   : > { %1373 = dma.done.wait (!%p1202_p2), %s981_s8, 2048  }
 0x2f8   : > { %1375 = vsyncadd (!%p1202_p2), %s981_s8, 4294965248  ;;  %p17_p3 = scmp.ge.s32.totalorder %s1460_s30, 4   ;;  %s1656_s24 = smov %s1382_s25 }
 0x2f9   : > { %s1657_s25 = smov %s1386_s26  ;;  %s1658_s26 = smov %s1471_s10 }
 0x2fa   : > { %s1659_s27 = smov %s1460_s30  ;;  %19 = sbr.rel (!%p17_p3) target bundleno = 3 (0x3), region = 83 }
 0x301   :  { %986 = vsyncpa [#allocation3], 1 }
 0x302   :  { %988 = vsyncpa [#allocation3 + $0x1], 1 }

</bundles_post_ra>
